<compile_context>
chip_gen: v7x
topology: tpu7x:2x2x1
jax: 0.10.0
libtpu: 0.0.40
codegen_flags: <defaults>
</compile_context>

<pallas_src>
import functools

import jax
import jax.numpy as jnp
from jax import lax
from jax.experimental import pallas as pl
from jax.experimental.pallas import tpu as pltpu

_EPS = 1e-6
_LANE = 128
_SUBLANE = 8
_TR_MAX = 32          # keeps the fori_loop carry accumulators in a few vregs
_UNROLL_MAX = 16      # statically unroll the stripe loop up to this length


def _cdiv(a, b):
    return -(-a // b)


@functools.lru_cache(maxsize=None)
def _vmem_params():
    """Per-TPU-generation (input budget, compiler VMEM limit) in bytes."""
    try:
        cap = int(pltpu.get_tpu_info().vmem_capacity_bytes)
    except Exception:  # no TPU info available -> conservative (v7x-sized)
        cap = 64 * 1024 * 1024
    if cap >= 96 * 1024 * 1024:                      # v5e / v6e: 128 MiB VMEM
        return 40 * 1024 * 1024, 96 * 1024 * 1024
    return 20 * 1024 * 1024, 44 * 1024 * 1024        # v7x: 64 MiB per TC


def _row_fold(r, s):
    """Fold factor f (dividing s) so the folded row count r*f reaches >= 16.

    Small N*C slabs waste most of the 8 sublanes per vreg and leave a single
    block on the "parallel" row axis (one idle TensorCore on v7x).  Folding
    spatial chunks into extra rows fixes both; per-row sums are recovered in
    the wrapper by summing the f sub-rows.
    """
    target = 2 * _SUBLANE
    if r >= target or s < 2 * _LANE:
        return 1
    for f in range(_cdiv(target, r), 4 * target + 1):
        if f > s:
            break
        if s % f == 0 and s // f >= _LANE:
            return f
    return 1


def _choose_tiles(r, s, pair_bytes, budget):
    """Pick (tr, ts): tr multiple of 8 (or full extent), ts multiple of 128
    (or full extent).  Double-buffered inputs stay under `budget` bytes, the
    per-step tile targets ~2 MiB of combined input bytes, the "parallel" row
    axis keeps >= 2 blocks when possible (v7x), and the grid keeps >= ~4
    total steps so the pipeline overlaps DMA with compute."""
    target_bytes = 2 * 1024 * 1024
    budget_elems = max(_SUBLANE * _LANE, budget // (2 * pair_bytes))
    tile_elems = max(_SUBLANE * _LANE,
                     min(target_bytes // pair_bytes, budget_elems))

    # Spatial (lane) tile.
    if s <= _LANE or (s % _LANE != 0 and s <= tile_elems // _SUBLANE):
        ts = s                                    # single full-extent block
    else:
        ts = min((s // _LANE) * _LANE,
                 max(_LANE, ((tile_elems // _SUBLANE) // _LANE) * _LANE))

    # Row (sublane) tile.
    if r <= _SUBLANE:
        tr = r
    else:
        tr = max(_SUBLANE,
                 min((r // _SUBLANE) * _SUBLANE,
                     ((tile_elems // max(ts, 1)) // _SUBLANE) * _SUBLANE,
                     _TR_MAX))
        if r >= 2 * _SUBLANE:                     # >= 2 blocks for v7x megacore
            tr = min(tr, max(_SUBLANE, ((r // 2) // _SUBLANE) * _SUBLANE))

    # Keep >= ~4 grid steps for DMA/compute overlap (when big enough to care).
    if ts % _LANE == 0 and s >= 4 * _LANE:
        nrb = _cdiv(r, tr)
        if nrb * _cdiv(s, ts) < 4:
            needed = _cdiv(4, nrb)
            ts = min(ts, max(_LANE, ((s // needed) // _LANE) * _LANE))
    return tr, ts


def _dice_partials_kernel(yp_ref, yt_ref, inter_ref, union_ref, *,
                          ts, rem, ragged):
    """Accumulate lane-dense partial intersection/union sums for one row block.

    yp_ref, yt_ref       : (tr, ts) input tiles (any float dtype; upcast here)
    inter_ref, union_ref : (tr, 128) f32 output blocks; their block index is
                           constant along the spatial grid axis so they stay
                           VMEM-resident and act as accumulators.

    Inputs are streamed one 128-lane stripe at a time straight from the refs,
    so the in-flight working set is a handful of vregs (no full-tile f32
    temporaries, no extra spill traffic).
    """
    k = pl.program_id(1)                       # spatial (reduction) axis, last
    is_last = k == pl.num_programs(1) - 1

    @pl.when(k == 0)
    def _():
        inter_ref[...] = jnp.zeros_like(inter_ref)
        union_ref[...] = jnp.zeros_like(union_ref)

    n_full_ts = ts // _LANE                    # full 128-lane stripes per tile
    n_full_rem = rem // _LANE                  # ... on the (ragged) last step

    pi = inter_ref[...]
    pu = union_ref[...]

    def stripe(lo, pi, pu):
        yp = yp_ref[:, pl.ds(lo, _LANE)].astype(jnp.float32)
        yt = yt_ref[:, pl.ds(lo, _LANE)].astype(jnp.float32)
        return pi + yp * yt, pu + (yp + yt)

    if (not ragged) and n_full_ts <= _UNROLL_MAX:
        for j in range(n_full_ts):             # static unroll, static offsets
            pi, pu = stripe(j * _LANE, pi, pu)
    else:
        # Trip count shrinks on the ragged last step -> no per-stripe masking.
        if ragged:
            n_full = jnp.where(is_last, n_full_rem, n_full_ts)
        else:
            n_full = n_full_ts

        def body(j, carry):
            pi, pu = carry
            lo = pl.multiple_of(j * _LANE, _LANE)
            return stripe(lo, pi, pu)

        pi, pu = lax.fori_loop(0, n_full, body, (pi, pu))

    inter_ref[...] = pi
    union_ref[...] = pu

    # Trailing stripe narrower than 128 lanes: exists either on the ragged
    # last spatial step or when the whole extent is one odd-width block.
    # Reduce it across lanes into lane 0 (the wrapper sums all 128 lanes, so
    # this is exact); gated by pl.when so the hot path carries no masking.
    tail_base = rem if ragged else ts
    tail_w = tail_base % _LANE
    if tail_w:
        tail_off = tail_base - tail_w

        @pl.when(is_last)
        def _():
            yp = yp_ref[:, tail_off:tail_off + tail_w].astype(jnp.float32)
            yt = yt_ref[:, tail_off:tail_off + tail_w].astype(jnp.float32)
            inter_ref[:, 0:1] += jnp.sum(yp * yt, axis=-1, keepdims=True)
            union_ref[:, 0:1] += jnp.sum(yp + yt, axis=-1, keepdims=True)


@functools.partial(jax.jit, static_argnames=("budget", "vmem_limit"))
def _dice_loss_impl(y_pred, y_true, eps, *, budget, vmem_limit):
    assert y_pred.shape == y_true.shape
    shape = y_pred.shape
    r0 = int(shape[0]) * int(shape[1])
    s0 = 1
    for d in shape[2:]:
        s0 *= int(d)

    # Fold spatial into rows when N*C is tiny; undone in the finalize below.
    f = _row_fold(r0, s0)
    r, s = r0 * f, s0 // f

    yp = y_pred.reshape(r, s)                  # contiguous reshape: no HBM copy
    yt = y_true.reshape(r, s)

    pair_bytes = yp.dtype.itemsize + yt.dtype.itemsize
    tr, ts = _choose_tiles(r, s, pair_bytes, budget)
    nrb = _cdiv(r, tr)
    nsb = _cdiv(s, ts)
    ragged = (s % ts) != 0
    rem = s - (nsb - 1) * ts                   # valid lanes in the last block

    kernel = functools.partial(_dice_partials_kernel,
                               ts=ts, rem=rem, ragged=ragged)

    out_rows = nrb * tr                        # rows >= r are padding
    inter_p, union_p = pl.pallas_call(
        kernel,
        out_shape=(
            jax.ShapeDtypeStruct((out_rows, _LANE), jnp.float32),
            jax.ShapeDtypeStruct((out_rows, _LANE), jnp.float32),
        ),
        grid_spec=pltpu.PrefetchScalarGridSpec(
            num_scalar_prefetch=0,
            grid=(nrb, nsb),
            in_specs=[
                pl.BlockSpec((tr, ts), lambda i, k: (i, k)),
                pl.BlockSpec((tr, ts), lambda i, k: (i, k)),
            ],
            out_specs=(
                pl.BlockSpec((tr, _LANE), lambda i, k: (i, 0)),
                pl.BlockSpec((tr, _LANE), lambda i, k: (i, 0)),
            ),
        ),
        compiler_params=pltpu.CompilerParams(
            dimension_semantics=("parallel", "arbitrary"),
            vmem_limit_bytes=vmem_limit,
        ),
    )(yp, yt)

    # Finalize in plain JAX.  NOTE: padded rows (index >= r) may contain
    # garbage from out-of-bounds input blocks; the kernel never mixes rows,
    # so slicing them off here is sufficient.
    intersection = jnp.sum(inter_p[:r], axis=-1)
    union = jnp.sum(union_p[:r], axis=-1)
    if f > 1:                                  # undo the row fold
        intersection = intersection.reshape(r0, f).sum(axis=-1)
        union = union.reshape(r0, f).sum(axis=-1)
    dice = (2.0 * intersection + eps) / (union + eps)
    return 1.0 - jnp.mean(dice)


def dice_loss(y_pred, y_true, *, eps=_EPS, vmem_budget_bytes=None):
    """Pallas TPU DiceLoss: 1 - mean over (N, C) of the per-row dice coeff.

    Inputs may be f32, bf16, etc.; the kernel upcasts per 128-lane stripe to
    f32 for accumulation, so callers can stream narrower operands to cut HBM
    traffic (the roofline for this kernel).
    """
    default_budget, vmem_limit = _vmem_params()
    budget = default_budget if vmem_budget_bytes is None else int(vmem_budget_bytes)
    return _dice_loss_impl(y_pred, y_true, jnp.float32(eps),
                           budget=budget, vmem_limit=vmem_limit)


def _dice_loss_ref(y_pred, y_true, eps=_EPS):
    dims = tuple(range(2, y_true.ndim))
    intersection = jnp.sum(y_pred * y_true, axis=dims)
    union = jnp.sum(y_pred + y_true, axis=dims)
    dice = (2.0 * intersection + eps) / (union + eps)
    return 1.0 - jnp.mean(dice)


if __name__ == "__main__":
    key = jax.random.PRNGKey(0)

    def _make(shape, k, dtype=jnp.float32):
        k1, k2 = jax.random.split(k)
        yp = jax.nn.sigmoid(jax.random.normal(k1, shape, jnp.float32)).astype(dtype)
        yt = (jax.random.uniform(k2, shape) > 0.5).astype(dtype)
        return yp, yt

    k0, k1, k2, k3 = jax.random.split(key, 4)

    # 1) Basic NCHW case: spatial multiple of 128, row-fold path (N*C=8 -> 16).
    yp, yt = _make((2, 4, 16, 16), k0)
    loss = dice_loss(yp, yt)
    jax.block_until_ready(loss)
    ref = _dice_loss_ref(yp, yt)
    assert jnp.allclose(loss, ref, atol=1e-5, rtol=1e-5), (loss, ref)

    # 2) Odd spatial extent, single full-extent block (narrow tail-reduce path).
    yp, yt = _make((2, 3, 17, 19), k1)
    loss = dice_loss(yp, yt)
    jax.block_until_ready(loss)
    ref = _dice_loss_ref(yp, yt)
    assert jnp.allclose(loss, ref, atol=1e-5, rtol=1e-5), (loss, ref)

    # 3) Tiny VMEM budget: forces spatial tiling + ragged last-step handling.
    yp, yt = _make((2, 4, 16, 41), k2)
    loss = dice_loss(yp, yt, vmem_budget_bytes=32 * 1024)
    jax.block_until_ready(loss)
    ref = _dice_loss_ref(yp, yt)
    assert jnp.allclose(loss, ref, atol=1e-5, rtol=1e-5), (loss, ref)

    # 4) Narrow-dtype streaming (bf16 inputs): kernel upcasts per stripe.
    yp, yt = _make((2, 4, 32, 32), k3, dtype=jnp.bfloat16)
    loss = dice_loss(yp, yt)
    jax.block_until_ready(loss)
    ref = _dice_loss_ref(yp.astype(jnp.float32), yt.astype(jnp.float32))
    assert jnp.allclose(loss, ref, atol=1e-3, rtol=1e-3), (loss, ref)

    print("KERNEL_OK")
</pallas_src>

<mosaic_0001>
module attributes {stable_mosaic.version = 11 : i64} {
  func.func @_dice_partials_kernel(%arg0: i32, %arg1: i32, %arg2: memref<8x128xf32, #tpu.memory_space<vmem>>, %arg3: memref<8x128xf32, #tpu.memory_space<vmem>>, %arg4: memref<8x128xf32, #tpu.memory_space<vmem>>, %arg5: memref<8x128xf32, #tpu.memory_space<vmem>>) attributes {dimension_semantics = [#tpu.dimension_semantics<parallel>, #tpu.dimension_semantics<arbitrary>], iteration_bounds = array<i64: 2, 1>, scalar_prefetch = 0 : i64, scratch_operands = 0 : i64, tpu.core_type = #tpu.core_type<tc>, window_params = [{transform_indices = @transform_0, window_bounds = array<i64: 8, 128>}, {transform_indices = @transform_1, window_bounds = array<i64: 8, 128>}, {transform_indices = @transform_2, window_bounds = array<i64: 8, 128>}, {transform_indices = @transform_3, window_bounds = array<i64: 8, 128>}]} {
    %c0_i32 = arith.constant 0 : i32
    %0 = arith.cmpi eq, %arg1, %c0_i32 : i32
    %1 = arith.extui %0 : i1 to i32
    %c0_i32_0 = arith.constant 0 : i32
    %2 = arith.cmpi ne, %1, %c0_i32_0 : i32
    scf.if %2 {
      %cst = arith.constant 0.000000e+00 : f32
      %13 = vector.broadcast %cst : f32 to vector<8x128xf32>
      %c0_12 = arith.constant 0 : index
      %c0_13 = arith.constant 0 : index
      %14 = vector.load %arg4[%c0_12, %c0_13] : memref<8x128xf32, #tpu.memory_space<vmem>>, vector<8x128xf32>
      tpu.vector_store %arg4[%c0_12, %c0_13], %13 {strides = array<i32>} : memref<8x128xf32, #tpu.memory_space<vmem>>, vector<8x128xf32>,
      %cst_14 = arith.constant 0.000000e+00 : f32
      %15 = vector.broadcast %cst_14 : f32 to vector<8x128xf32>
      %c0_15 = arith.constant 0 : index
      %c0_16 = arith.constant 0 : index
      %16 = vector.load %arg5[%c0_15, %c0_16] : memref<8x128xf32, #tpu.memory_space<vmem>>, vector<8x128xf32>
      tpu.vector_store %arg5[%c0_15, %c0_16], %15 {strides = array<i32>} : memref<8x128xf32, #tpu.memory_space<vmem>>, vector<8x128xf32>,
    } else {
    }
    %c0 = arith.constant 0 : index
    %c0_1 = arith.constant 0 : index
    %3 = vector.load %arg4[%c0, %c0_1] : memref<8x128xf32, #tpu.memory_space<vmem>>, vector<8x128xf32>
    %c0_2 = arith.constant 0 : index
    %c0_3 = arith.constant 0 : index
    %4 = vector.load %arg5[%c0_2, %c0_3] : memref<8x128xf32, #tpu.memory_space<vmem>>, vector<8x128xf32>
    %c0_4 = arith.constant 0 : index
    %c0_5 = arith.constant 0 : index
    %5 = vector.load %arg2[%c0_4, %c0_5] : memref<8x128xf32, #tpu.memory_space<vmem>>, vector<8x128xf32>
    %c0_6 = arith.constant 0 : index
    %c0_7 = arith.constant 0 : index
    %6 = vector.load %arg3[%c0_6, %c0_7] : memref<8x128xf32, #tpu.memory_space<vmem>>, vector<8x128xf32>
    %7 = arith.mulf %5, %6 : vector<8x128xf32>
    %8 = arith.addf %3, %7 : vector<8x128xf32>
    %9 = arith.addf %5, %6 : vector<8x128xf32>
    %10 = arith.addf %4, %9 : vector<8x128xf32>
    %c0_8 = arith.constant 0 : index
    %c0_9 = arith.constant 0 : index
    %11 = vector.load %arg4[%c0_8, %c0_9] : memref<8x128xf32, #tpu.memory_space<vmem>>, vector<8x128xf32>
    tpu.vector_store %arg4[%c0_8, %c0_9], %8 {strides = array<i32>} : memref<8x128xf32, #tpu.memory_space<vmem>>, vector<8x128xf32>,
    %c0_10 = arith.constant 0 : index
    %c0_11 = arith.constant 0 : index
    %12 = vector.load %arg5[%c0_10, %c0_11] : memref<8x128xf32, #tpu.memory_space<vmem>>, vector<8x128xf32>
    tpu.vector_store %arg5[%c0_10, %c0_11], %10 {strides = array<i32>} : memref<8x128xf32, #tpu.memory_space<vmem>>, vector<8x128xf32>,
    return
  }
  func.func @transform_0(%arg0: i32, %arg1: i32) -> (i32, i32) {
    %c0_i32 = arith.constant 0 : i32
    return %arg0, %arg1 : i32, i32
  }
  func.func @transform_1(%arg0: i32, %arg1: i32) -> (i32, i32) {
    %c0_i32 = arith.constant 0 : i32
    return %arg0, %arg1 : i32, i32
  }
  func.func @transform_2(%arg0: i32, %arg1: i32) -> (i32, i32) {
    %c0_i32 = arith.constant 0 : i32
    %c0_i32_0 = arith.constant 0 : i32
    return %arg0, %c0_i32 : i32, i32
  }
  func.func @transform_3(%arg0: i32, %arg1: i32) -> (i32, i32) {
    %c0_i32 = arith.constant 0 : i32
    %c0_i32_0 = arith.constant 0 : i32
    return %arg0, %c0_i32 : i32, i32
  }
}

</mosaic_0001>

<bundles_post_ra>
// kernel: _dice_loss_impl.1
= control target key start
LH: loop header
LB: loop body
LE: loop exit
PB: predicated region body
PF: predicated region fallthrough
CT: control target
= control target key end

     0   :  { %s434_s12 = smov 0   ;;  %s436_s13 = smov 0   ;;  %s461_s0 = inlined_call_operand.vmem [shape: f32[16,128], index: 0, kind: input, shape index: {}]   ;;  %s462_s1 = inlined_call_operand.vmem [shape: f32[16,128], index: 1, kind: input, shape index: {}]   ;;  %s463_s2 = inlined_call_operand.vmem [shape: f32[16,128], index: 2, kind: output, shape index: {0}]   ;;  %s464_s3 = inlined_call_operand.vmem [shape: f32[16,128], index: 3, kind: output, shape index: {1}]  }
   0x1   :  { %s438_s14 = smov 0  }
   0x2 LB: > { %s26_s15 = sadd.s32 1, %s408_s13  ;;  %p358_p0 = scmp.ge.s32.totalorder %s412_s14, 1  ;;  %s412_s14 = sphi %s438_s14, %s14_s14   ;;  %s408_s13 = sphi %s436_s13, %s466_s13   ;;  %s404_s12 = sphi %s434_s12, %s465_s12  }
   0x3   : > { %p28_p1 = scmp.ge.s32.totalorder %s26_s15, 2  ;;  %p170_p2 = scmp.lt.s32.totalorder %s412_s14, 3 }
   0x5   : > { %s468_s15 = smov (%p28_p1, %s26_s15), 0  ;;  %p171_p3 = pnand %p358_p0, %p170_p2 }
   0x6   : > { %p206_p4 = scmp.lt.s32.totalorder (!%p171_p3), %s404_s12, 1 }
   0x7   : > { %174 = sbr.rel (%p171_p3) target bundleno = 22 (0x16), region = 28 }
   0xe   : > { %s470_s12 = smov (!%p206_p4, %s404_s12), 1 }
   0xf   : > { %s359_s16 = sshll.u32 %s470_s12, 3 }
  0x10   : > { %s212_s19 = scalar_lea.vmem %s461_s0, %s359_s16  ;;  %s219_s22 = scalar_lea.vmem %s462_s1, %s359_s16 }
  0x11   : > { %v236_v0 = vld [vmem:[%s212_s19] sm:$0xff]  ;;  %s223_s25 = scalar_lea.vmem %s463_s2, %s359_s16  ;;  %s227_s28 = scalar_lea.vmem %s464_s3, %s359_s16 }
  0x12   : > { %v237_v1 = vld [vmem:[%s219_s22] sm:$0xff] }
  0x13   : > { %v238_v2 = vmul.f32 %v237_v1, %v236_v0  ;;  %v240_v3 = vadd.f32 %v237_v1, %v236_v0 }
  0x15   : > { %242 = vst [vmem:[%s223_s25] sm:$0xff] %v238_v2  ;;  %243 = vst [vmem:[%s227_s28] sm:$0xff] %v240_v3 }
  0x16 PF: > { %s14_s14 = sadd.s32 1, %s412_s14   ;;  %s465_s12 = smov %s408_s13 }
  0x17   : > { %p11_p5 = scmp.ge.s32.totalorder %s14_s14, 4   ;;  %s466_s13 = smov %s468_s15 }
  0x19   :  { %13 = sbr.rel (!%p11_p5) target bundleno = 2 (0x2), region = 77 }

</bundles_post_ra>
